<compile_context>
chip_gen: v7x
topology: tpu7x:2x2x1
jax: 0.10.0
libtpu: 0.0.40
codegen_flags: <defaults>
</compile_context>

<pallas_src>
import jax
import jax.numpy as jnp
from jax.experimental import pallas as pl
from jax.experimental.pallas import tpu as pltpu


def mlp_kernel(x_ref,
               w1_ref, b1_ref,
               w2_ref, b2_ref,
               w3_ref, b3_ref,
               w4_ref, b4_ref,
               o_ref):
    """One batch tile, feature-major.

    x_ref: (8, tb) f32, batch on lanes.
    w1..w3: (out, in) bf16 (VMEM-resident), b1..b3: (out, 1) f32.
    w4: (40, 1) f32, b4: (1, 1) f32.
    o_ref: (1, tb) f32 -- lane-dense output store.
    """
    x = x_ref[...].astype(jnp.bfloat16)                       # (8, tb)

    def sigmoid(h):
        # exp on EUP + approx reciprocal on EUP: keeps the VALU slot free.
        return pl.reciprocal(1.0 + jnp.exp(-h), approx=True)

    # fc1 + sigmoid -> (20, tb)
    h1 = jnp.dot(w1_ref[...], x,
                 preferred_element_type=jnp.float32) + b1_ref[...]
    h1 = sigmoid(h1)

    # fc2 + sigmoid -> (40, tb)
    h2 = jnp.dot(w2_ref[...], h1.astype(jnp.bfloat16),
                 preferred_element_type=jnp.float32) + b2_ref[...]
    h2 = sigmoid(h2)

    # fc3 + relu -> (40, tb)
    h3 = jnp.dot(w3_ref[...], h2.astype(jnp.bfloat16),
                 preferred_element_type=jnp.float32) + b3_ref[...]
    h3 = jnp.maximum(h3, 0.0)

    # fc4 (40 -> 1) + relu: lane-dense VPU multiply + sublane reduce.
    y = jnp.sum(h3 * w4_ref[...], axis=0, keepdims=True) + b4_ref[...]
    o_ref[...] = jnp.maximum(y, 0.0)                          # (1, tb)


def mynn_forward(x, kparams, *, tb=2048):
    """x: (B, 8) f32 -> (B, 1) f32.  kparams from prepare_params()."""
    B = x.shape[0]
    xT = x.T  # (8, B): layout plumbing so batch lands on the lane axis.

    # Tile selection: lane-align tb; if one tile covers the batch, use a
    # full-extent block (always legal).  For B > tb the last ragged tile is
    # masked by Pallas -- no wrapper-side jnp.pad copy of x.
    tb_eff = min(tb, B)
    tb_eff = ((tb_eff + 127) // 128) * 128
    if tb_eff >= B:
        tb_eff = B
    n_tiles = pl.cdiv(B, tb_eff)

    def resident(arr):
        # Whole array, same block every grid step -> stays VMEM-resident.
        return pl.BlockSpec(arr.shape, lambda i: (0, 0))

    out = pl.pallas_call(
        mlp_kernel,
        out_shape=jax.ShapeDtypeStruct((1, B), jnp.float32),
        grid=(n_tiles,),
        in_specs=[
            pl.BlockSpec((8, tb_eff), lambda i: (0, i)),
            resident(kparams["w1"]), resident(kparams["b1"]),
            resident(kparams["w2"]), resident(kparams["b2"]),
            resident(kparams["w3"]), resident(kparams["b3"]),
            resident(kparams["w4"]), resident(kparams["b4"]),
        ],
        out_specs=pl.BlockSpec((1, tb_eff), lambda i: (0, i)),
        compiler_params=pltpu.CompilerParams(
            # Independent batch tiles: lets v7x shard grid steps across its
            # 2 TensorCores; harmless on v5e/v6e.  32 MiB scoped VMEM is safe
            # on all generations and leaves ample room for the (8/40, tb)
            # intermediates plus double-buffered x/out tiles.
            dimension_semantics=("parallel",),
            vmem_limit_bytes=32 * 1024 * 1024,
        ),
    )(xT,
      kparams["w1"], kparams["b1"],
      kparams["w2"], kparams["b2"],
      kparams["w3"], kparams["b3"],
      kparams["w4"], kparams["b4"])

    return out.reshape(B, 1)


def init_params(key):
    """PyTorch nn.Linear default init U(-1/sqrt(fan_in), ..), native (out, in)."""
    dims = [(8, 20), (20, 40), (40, 40), (40, 1)]
    params = {}
    for i, (fan_in, fan_out) in enumerate(dims, start=1):
        key, kw, kb = jax.random.split(key, 3)
        bound = 1.0 / jnp.sqrt(jnp.float32(fan_in))
        params[f"w{i}"] = jax.random.uniform(
            kw, (fan_out, fan_in), jnp.float32, -bound, bound)
        params[f"b{i}"] = jax.random.uniform(
            kb, (fan_out,), jnp.float32, -bound, bound)
    return params


def prepare_params(params):
    """One-time layout/dtype prep (outside jit): fc1-3 weights -> bf16,
    biases -> (out, 1) f32 columns, fc4 weight -> (40, 1) f32 column."""
    kp = {}
    for i in (1, 2, 3):
        kp[f"w{i}"] = params[f"w{i}"].astype(jnp.bfloat16)
        kp[f"b{i}"] = params[f"b{i}"].reshape(-1, 1)
    kp["w4"] = params["w4"].reshape(-1, 1)   # (40, 1) f32
    kp["b4"] = params["b4"].reshape(1, 1)    # (1, 1)  f32
    return kp


def reference_forward(x, params):
    h1 = jax.nn.sigmoid(x @ params["w1"].T + params["b1"])
    h2 = jax.nn.sigmoid(h1 @ params["w2"].T + params["b2"])
    h3 = jnp.maximum(h2 @ params["w3"].T + params["b3"], 0.0)
    return jnp.maximum(h3 @ params["w4"].T + params["b4"], 0.0)


if __name__ == "__main__":
    key = jax.random.PRNGKey(0)
    key, kx = jax.random.split(key)
    batch = 300  # not a multiple of 128: exercises full-extent and ragged paths
    x = jax.random.normal(kx, (batch, 8), jnp.float32)

    params = init_params(key)
    kparams = prepare_params(params)

    fwd = jax.jit(mynn_forward, static_argnames=("tb",))

    # Default large-tile path (single full-extent tile at this small batch).
    y = fwd(x, kparams)
    jax.block_until_ready(y)

    # Multi-tile path with a ragged (masked) last tile.
    y_tiled = fwd(x, kparams, tb=128)
    jax.block_until_ready(y_tiled)

    y_ref = reference_forward(x, params)
    assert y.shape == (batch, 1)
    # bf16 MXU operands + approx-reciprocal sigmoid -> loose tolerance vs f32 ref.
    assert jnp.allclose(y, y_ref, atol=2e-2, rtol=2e-2), \
        float(jnp.max(jnp.abs(y - y_ref)))
    assert jnp.allclose(y_tiled, y_ref, atol=2e-2, rtol=2e-2), \
        float(jnp.max(jnp.abs(y_tiled - y_ref)))

    print("KERNEL_OK")
</pallas_src>

<mosaic_0001>
module attributes {stable_mosaic.version = 11 : i64} {
  func.func @mlp_kernel(%arg0: i32, %arg1: memref<8x300xf32, #tpu.memory_space<vmem>>, %arg2: memref<20x8xbf16, #tpu.memory_space<vmem>>, %arg3: memref<20x1xf32, #tpu.memory_space<vmem>>, %arg4: memref<40x20xbf16, #tpu.memory_space<vmem>>, %arg5: memref<40x1xf32, #tpu.memory_space<vmem>>, %arg6: memref<40x40xbf16, #tpu.memory_space<vmem>>, %arg7: memref<40x1xf32, #tpu.memory_space<vmem>>, %arg8: memref<40x1xf32, #tpu.memory_space<vmem>>, %arg9: memref<1x1xf32, #tpu.memory_space<vmem>>, %arg10: memref<1x300xf32, #tpu.memory_space<vmem>>) attributes {dimension_semantics = [#tpu.dimension_semantics<parallel>], iteration_bounds = array<i64: 1>, scalar_prefetch = 0 : i64, scratch_operands = 0 : i64, tpu.core_type = #tpu.core_type<tc>, window_params = [{transform_indices = @transform_0, window_bounds = array<i64: 8, 300>}, {pipeline_mode = #tpu.pipeline_mode<synchronous>, transform_indices = @transform_1, window_bounds = array<i64: 20, 8>}, {pipeline_mode = #tpu.pipeline_mode<synchronous>, transform_indices = @transform_2, window_bounds = array<i64: 20, 1>}, {pipeline_mode = #tpu.pipeline_mode<synchronous>, transform_indices = @transform_3, window_bounds = array<i64: 40, 20>}, {pipeline_mode = #tpu.pipeline_mode<synchronous>, transform_indices = @transform_4, window_bounds = array<i64: 40, 1>}, {pipeline_mode = #tpu.pipeline_mode<synchronous>, transform_indices = @transform_5, window_bounds = array<i64: 40, 40>}, {pipeline_mode = #tpu.pipeline_mode<synchronous>, transform_indices = @transform_6, window_bounds = array<i64: 40, 1>}, {pipeline_mode = #tpu.pipeline_mode<synchronous>, transform_indices = @transform_7, window_bounds = array<i64: 40, 1>}, {pipeline_mode = #tpu.pipeline_mode<synchronous>, transform_indices = @transform_8, window_bounds = array<i64: 1, 1>}, {transform_indices = @transform_9, window_bounds = array<i64: 1, 300>}]} {
    %c0 = arith.constant 0 : index
    %c0_0 = arith.constant 0 : index
    %0 = vector.load %arg1[%c0, %c0_0] : memref<8x300xf32, #tpu.memory_space<vmem>>, vector<8x300xf32>
    %1 = arith.truncf %0 : vector<8x300xf32> to vector<8x300xbf16>
    %c0_1 = arith.constant 0 : index
    %c0_2 = arith.constant 0 : index
    %2 = vector.load %arg2[%c0_1, %c0_2] : memref<20x8xbf16, #tpu.memory_space<vmem>>, vector<20x8xbf16>
    %cst = arith.constant dense<0.000000e+00> : vector<20x300xf32>
    %3 = tpu.matmul %2, %1, %cst {dimension_numbers = #tpu.dot_dimension_numbers<[1], [0], [0], [1], [0, 0, 1, 1], [], []>} : vector<20x8xbf16>, vector<8x300xbf16>, vector<20x300xf32> -> vector<20x300xf32>
    %c0_3 = arith.constant 0 : index
    %c0_4 = arith.constant 0 : index
    %4 = vector.load %arg3[%c0_3, %c0_4] : memref<20x1xf32, #tpu.memory_space<vmem>>, vector<20x1xf32>
    %5 = vector.broadcast %4 : vector<20x1xf32> to vector<20x300xf32>
    %6 = arith.addf %3, %5 : vector<20x300xf32>
    %cst_5 = arith.constant 0.000000e+00 : f32
    %7 = vector.broadcast %cst_5 : f32 to vector<20x300xf32>
    %8 = arith.subf %7, %6 : vector<20x300xf32>
    %9 = math.exp %8 : vector<20x300xf32>
    %cst_6 = arith.constant 1.000000e+00 : f32
    %10 = vector.broadcast %cst_6 : f32 to vector<20x300xf32>
    %11 = arith.addf %10, %9 : vector<20x300xf32>
    %12 = tpu.reciprocal %11 {approx = true} : vector<20x300xf32> -> vector<20x300xf32>
    %c0_7 = arith.constant 0 : index
    %c0_8 = arith.constant 0 : index
    %13 = vector.load %arg4[%c0_7, %c0_8] : memref<40x20xbf16, #tpu.memory_space<vmem>>, vector<40x20xbf16>
    %14 = arith.truncf %12 : vector<20x300xf32> to vector<20x300xbf16>
    %cst_9 = arith.constant dense<0.000000e+00> : vector<40x300xf32>
    %15 = tpu.matmul %13, %14, %cst_9 {dimension_numbers = #tpu.dot_dimension_numbers<[1], [0], [0], [1], [0, 0, 1, 1], [], []>} : vector<40x20xbf16>, vector<20x300xbf16>, vector<40x300xf32> -> vector<40x300xf32>
    %c0_10 = arith.constant 0 : index
    %c0_11 = arith.constant 0 : index
    %16 = vector.load %arg5[%c0_10, %c0_11] : memref<40x1xf32, #tpu.memory_space<vmem>>, vector<40x1xf32>
    %17 = vector.broadcast %16 : vector<40x1xf32> to vector<40x300xf32>
    %18 = arith.addf %15, %17 : vector<40x300xf32>
    %cst_12 = arith.constant 0.000000e+00 : f32
    %19 = vector.broadcast %cst_12 : f32 to vector<40x300xf32>
    %20 = arith.subf %19, %18 : vector<40x300xf32>
    %21 = math.exp %20 : vector<40x300xf32>
    %cst_13 = arith.constant 1.000000e+00 : f32
    %22 = vector.broadcast %cst_13 : f32 to vector<40x300xf32>
    %23 = arith.addf %22, %21 : vector<40x300xf32>
    %24 = tpu.reciprocal %23 {approx = true} : vector<40x300xf32> -> vector<40x300xf32>
    %c0_14 = arith.constant 0 : index
    %c0_15 = arith.constant 0 : index
    %25 = vector.load %arg6[%c0_14, %c0_15] : memref<40x40xbf16, #tpu.memory_space<vmem>>, vector<40x40xbf16>
    %26 = arith.truncf %24 : vector<40x300xf32> to vector<40x300xbf16>
    %cst_16 = arith.constant dense<0.000000e+00> : vector<40x300xf32>
    %27 = tpu.matmul %25, %26, %cst_16 {dimension_numbers = #tpu.dot_dimension_numbers<[1], [0], [0], [1], [0, 0, 1, 1], [], []>} : vector<40x40xbf16>, vector<40x300xbf16>, vector<40x300xf32> -> vector<40x300xf32>
    %c0_17 = arith.constant 0 : index
    %c0_18 = arith.constant 0 : index
    %28 = vector.load %arg7[%c0_17, %c0_18] : memref<40x1xf32, #tpu.memory_space<vmem>>, vector<40x1xf32>
    %29 = vector.broadcast %28 : vector<40x1xf32> to vector<40x300xf32>
    %30 = arith.addf %27, %29 : vector<40x300xf32>
    %cst_19 = arith.constant 0.000000e+00 : f32
    %31 = vector.broadcast %cst_19 : f32 to vector<40x300xf32>
    %32 = arith.maximumf %30, %31 : vector<40x300xf32>
    %c0_20 = arith.constant 0 : index
    %c0_21 = arith.constant 0 : index
    %33 = vector.load %arg8[%c0_20, %c0_21] : memref<40x1xf32, #tpu.memory_space<vmem>>, vector<40x1xf32>
    %34 = vector.broadcast %33 : vector<40x1xf32> to vector<40x300xf32>
    %35 = arith.mulf %32, %34 : vector<40x300xf32>
    %cst_22 = arith.constant dense<0.000000e+00> : vector<300xf32>
    %36 = vector.multi_reduction <add>, %35, %cst_22 [0] : vector<40x300xf32> to vector<300xf32>
    %37 = vector.shape_cast %36 : vector<300xf32> to vector<1x300xf32>
    %c0_23 = arith.constant 0 : index
    %c0_24 = arith.constant 0 : index
    %38 = vector.load %arg9[%c0_23, %c0_24] : memref<1x1xf32, #tpu.memory_space<vmem>>, vector<1x1xf32>
    %39 = vector.broadcast %38 : vector<1x1xf32> to vector<1x300xf32>
    %40 = arith.addf %37, %39 : vector<1x300xf32>
    %cst_25 = arith.constant 0.000000e+00 : f32
    %41 = vector.broadcast %cst_25 : f32 to vector<1x300xf32>
    %42 = arith.maximumf %40, %41 : vector<1x300xf32>
    %c0_26 = arith.constant 0 : index
    %c0_27 = arith.constant 0 : index
    %43 = vector.load %arg10[%c0_26, %c0_27] : memref<1x300xf32, #tpu.memory_space<vmem>>, vector<1x300xf32>
    tpu.vector_store %arg10[%c0_26, %c0_27], %42 {strides = array<i32>} : memref<1x300xf32, #tpu.memory_space<vmem>>, vector<1x300xf32>,
    return
  }
  func.func @transform_0(%arg0: i32) -> (i32, i32) {
    %c0_i32 = arith.constant 0 : i32
    %c0_i32_0 = arith.constant 0 : i32
    return %c0_i32, %arg0 : i32, i32
  }
  func.func @transform_1(%arg0: i32) -> (i32, i32) {
    %c0_i32 = arith.constant 0 : i32
    %c0_i32_0 = arith.constant 0 : i32
    %c0_i32_1 = arith.constant 0 : i32
    return %c0_i32, %c0_i32_0 : i32, i32
  }
  func.func @transform_2(%arg0: i32) -> (i32, i32) {
    %c0_i32 = arith.constant 0 : i32
    %c0_i32_0 = arith.constant 0 : i32
    %c0_i32_1 = arith.constant 0 : i32
    return %c0_i32, %c0_i32_0 : i32, i32
  }
  func.func @transform_3(%arg0: i32) -> (i32, i32) {
    %c0_i32 = arith.constant 0 : i32
    %c0_i32_0 = arith.constant 0 : i32
    %c0_i32_1 = arith.constant 0 : i32
    return %c0_i32, %c0_i32_0 : i32, i32
  }
  func.func @transform_4(%arg0: i32) -> (i32, i32) {
    %c0_i32 = arith.constant 0 : i32
    %c0_i32_0 = arith.constant 0 : i32
    %c0_i32_1 = arith.constant 0 : i32
    return %c0_i32, %c0_i32_0 : i32, i32
  }
  func.func @transform_5(%arg0: i32) -> (i32, i32) {
    %c0_i32 = arith.constant 0 : i32
    %c0_i32_0 = arith.constant 0 : i32
    %c0_i32_1 = arith.constant 0 : i32
    return %c0_i32, %c0_i32_0 : i32, i32
  }
  func.func @transform_6(%arg0: i32) -> (i32, i32) {
    %c0_i32 = arith.constant 0 : i32
    %c0_i32_0 = arith.constant 0 : i32
    %c0_i32_1 = arith.constant 0 : i32
    return %c0_i32, %c0_i32_0 : i32, i32
  }
  func.func @transform_7(%arg0: i32) -> (i32, i32) {
    %c0_i32 = arith.constant 0 : i32
    %c0_i32_0 = arith.constant 0 : i32
    %c0_i32_1 = arith.constant 0 : i32
    return %c0_i32, %c0_i32_0 : i32, i32
  }
  func.func @transform_8(%arg0: i32) -> (i32, i32) {
    %c0_i32 = arith.constant 0 : i32
    %c0_i32_0 = arith.constant 0 : i32
    %c0_i32_1 = arith.constant 0 : i32
    return %c0_i32, %c0_i32_0 : i32, i32
  }
  func.func @transform_9(%arg0: i32) -> (i32, i32) {
    %c0_i32 = arith.constant 0 : i32
    %c0_i32_0 = arith.constant 0 : i32
    return %c0_i32, %arg0 : i32, i32
  }
}

</mosaic_0001>

<bundles_post_ra>
// kernel: mynn_forward.1
= control target key start
LH: loop header
LB: loop body
LE: loop exit
PB: predicated region body
PF: predicated region fallthrough
CT: control target
= control target key end

     0   :  { %s1282_s0 = inlined_call_operand.vmem [shape: f32[8,300], index: 0, kind: input, shape index: {}]   ;;  %s1283_s1 = inlined_call_operand.vmem [shape: bf16[20,8], index: 1, kind: input, shape index: {}]   ;;  %s1284_s2 = inlined_call_operand.vmem [shape: f32[20,1], index: 2, kind: input, shape index: {}]   ;;  %s1285_s3 = inlined_call_operand.vmem [shape: bf16[40,20], index: 3, kind: input, shape index: {}]   ;;  %s1286_s4 = inlined_call_operand.vmem [shape: f32[40,1], index: 4, kind: input, shape index: {}]   ;;  %s1287_s5 = inlined_call_operand.vmem [shape: bf16[40,40], index: 5, kind: input, shape index: {}]   ;;  %s1288_s6 = inlined_call_operand.vmem [shape: f32[40,1], index: 6, kind: input, shape index: {}]   ;;  %s1289_s7 = inlined_call_operand.vmem [shape: f32[40,1], index: 7, kind: input, shape index: {}]   ;;  %s1290_s8 = inlined_call_operand.<no memory space> [shape: f32[1,1], index: 8, kind: input, shape index: {}]   ;;  %s1291_s9 = inlined_call_operand.hbm [shape: f32[1,300], index: 9, kind: output, shape index: {}]  }
   0x1   :  { %v14_v0 = vstv %s1290_s8 }
   0x2   :  { %15 = vst [vmem:[#allocation2] sm:$0x1] %v14_v0 }
   0x3   :  { %v37_v1 = vld [vmem:[%s1282_s0 + $0x8] sm:$0xff]  ;;  %vm78_vm0 = vcmask 1043456   ;;  %v38_v2 = vld [vmem:[%s1282_s0 + $0x10] sm:$0xff]  ;;  %v36_v3 = vld [vmem:[%s1282_s0] sm:$0xff]  ;;  %v1066_v7 = vmov 0   ;;  %vm71_vm1 = vcmask 64512  }
   0x4   :  { %v40_v4 = vpack.c.bf16 %v37_v1, %v37_v1  ;;  %v41_v5 = vpack.c.bf16 %v38_v2, %v38_v2  ;;  %v39_v6 = vpack.c.bf16 %v36_v3, %v36_v3  ;;  %120 = vmatprep.mubr.bf16.mxu0 %v1066_v7  ;;  %v938_v8 = vld [vmem:[%s1283_s1] sm:$0xff]   ;;  %936 = vset.pattern.permute.xlu0 %v1066_v7  ;;  %v939_v9 = vld [vmem:[%s1283_s1 + $0x8] ss:$0 sps:$4 sm:$0x33]   ;;  %v47_v13 = vld [vmem:[%s1284_s2 + $0x10] sm:$0xf] }
   0x5   :  { %v45_v10 = vld [vmem:[%s1284_s2] sm:$0xff]  ;;  %937 = vset.pattern.permute.xlu1 %v1066_v7  ;;  %892 = vmatprep.mubr.msk.bf16.mxu1 %vm71_vm1, %v938_v8  ;;  %v46_v14 = vld [vmem:[%s1284_s2 + $0x8] sm:$0xff]  ;;  %v245_v17 = vld [vmem:[%s1286_s4 + $0x10] sm:$0xff] }
   0x6   :  { %851 = vmatprep.subr.msk.bf16.mxu0 %vm78_vm0, %v40_v4  ;;  %930 = vmatprep.subr.msk.bf16.mxu1 %vm78_vm0, %v41_v5  ;;  %v80_v11 = vsel %vm78_vm0, %v39_v6, 0  ;;  %v86_v12 = vsel %vm78_vm0, %v41_v5, 0  ;;  %v243_v15 = vld [vmem:[%s1286_s4] sm:$0xff]  ;;  %v244_v16 = vld [vmem:[%s1286_s4 + $0x8] sm:$0xff] }
   0x7   :  { %89 = vmatpush1.bf16.msra.mxu0 %v80_v11  ;;  %891 = vmatpush3.bf16.msra.mxu1 %v86_v12 }
   0x8   :  { %50 = vperm.xlu0 %936, %v45_v10   ;;  %60 = vperm.xlu1 %937, %v47_v13  }
   0xa   :  { %852 = vmatmul.mubr.msk.bf16.vlgmr.msra.gmra.mrb[0].mxu0 %vm71_vm1, %v938_v8  ;;  %893 = vmatmul.mubr.msk.bf16.vlgmr.msra.gmra.mrb[0].mxu1 %vm71_vm1, %v939_v9 }
   0xb   :  { %130 = vmatprep.mubr.bf16.mxu0 %v1066_v7  ;;  %338 = vmatprep.mubr.bf16.mxu1 %v1066_v7 }
   0xc   :  { %55 = vperm.xlu0 %936, %v46_v14   ;;  %250 = vperm.xlu1 %937, %v243_v15  }
   0xd   :  { %16 = vsyncpa [#allocation4], 0  ;;  %v246_v18 = vld [vmem:[%s1286_s4 + $0x18] sm:$0xff]  ;;  %v247_v19 = vld [vmem:[%s1286_s4 + $0x20] sm:$0xff]  ;;  %v1067_v31 = vmov 0.0   ;;  %vm1068_vm2 = vmmov 0  }
   0xe   :  { %v512_v20 = vld [vmem:[%s1288_s6] sm:$0xff]  ;;  %v513_v21 = vld [vmem:[%s1288_s6 + $0x8] sm:$0xff]  ;;  %v514_v22 = vld [vmem:[%s1288_s6 + $0x10] sm:$0xff]  ;;  %896 = vmatprep.subr.bf16.mxu0 %v1067_v31  ;;  %vm296_vm3 = vcmask 1041408   ;;  %vm286_vm4 = vcmask 162816   ;;  %vm555_vm5 = vcmask 326656  }
   0xf   :  { %v515_v23 = vld [vmem:[%s1288_s6 + $0x18] sm:$0xff]  ;;  %v706_v24 = vld [vmem:[%s1289_s7] sm:$0xff]  ;;  %v707_v25 = vld [vmem:[%s1289_s7 + $0x8] sm:$0xff]  ;;  %vm771_vm6 = vcmask 359424  }
  0x10   :  { %255 = vperm.xlu0 %936, %v244_v16   ;;  %260 = vperm.xlu1 %937, %v245_v17   ;;  %v516_v26 = vld [vmem:[%s1288_s6 + $0x20] sm:$0xff]  ;;  %v708_v27 = vld [vmem:[%s1289_s7 + $0x10] sm:$0xff]  ;;  %v709_v28 = vld [vmem:[%s1289_s7 + $0x18] sm:$0xff] }
  0x11   :  { %v710_v29 = vld [vmem:[%s1289_s7 + $0x20] sm:$0xff] }
  0x12   :  { %853 = vmatmul.mubr.msk.bf16.gmra.mrb[4].mxu0 %vm71_vm1, %v939_v9  ;;  %v787_v30 = vld [vmem:[#allocation2] sm:$0x1] }
  0x13   :  { %900 = vmatprep.mubr.msk.bf16.mxu0 %vm1068_vm2, %v1067_v31 }
  0x14   :  { %265 = vperm.xlu0 %936, %v246_v18   ;;  %270 = vperm.xlu1 %937, %v247_v19  }
  0x18   :  { %519 = vperm.xlu0 %936, %v512_v20   ;;  %524 = vperm.xlu1 %937, %v513_v21  }
  0x1c   :  { %529 = vperm.xlu0 %936, %v514_v22   ;;  %534 = vperm.xlu1 %937, %v515_v23  }
  0x20   :  { %713 = vperm.xlu0 %936, %v706_v24   ;;  %718 = vperm.xlu1 %937, %v707_v25  }
  0x24   :  { %539 = vperm.xlu0 %936, %v516_v26   ;;  %723 = vperm.xlu1 %937, %v708_v27  }
  0x28   :  { %728 = vperm.xlu0 %936, %v709_v28   ;;  %733 = vperm.xlu1 %937, %v710_v29  }
  0x2c   :  { %790 = vperm.xlu0 %936, %v787_v30  }
  0x87   :  { %v51_v32 = vpop.permute.xlu0 %50  ;;  %v61_v34 = vpop.permute.xlu1 %60 }
  0x8b   :  { %v56_v33 = vpop.permute.xlu0 %55 }
  0xdd   :  { %v122_v35 = vpop.f32.mrb[0].mxu0  ;;  %v894_v36 = vpop.f32.mrb[0].mxu1 }
  0xde   :  { %v123_v37 = vadd.f32 %v122_v35, %v51_v32  ;;  %v182_v38 = vadd.f32 %v894_v36, %v61_v34  ;;  %v124_v39 = vpop.f32.mrb[1].mxu0  ;;  %v173_v40 = vpop.f32.mrb[1].mxu1 }
  0xdf   :  { %v125_v41 = vadd.f32 %v124_v39, %v51_v32  ;;  %v174_v42 = vadd.f32 %v173_v40, %v51_v32  ;;  %v126_v43 = vpop.f32.mrb[2].mxu0  ;;  %v895_v44 = vpop.f32.mrb[2].mxu1 }
  0xe0   :  { %v187_v45 = vsub.f32 0.0, %v123_v37  ;;  %v195_v46 = vsub.f32 0.0, %v182_v38  ;;  %v127_v47 = vadd.f32 %v126_v43, %v56_v33  ;;  %v128_v48 = vpop.f32.mrb[3].mxu0  ;;  %v176_v49 = vpop.f32.mrb[3].mxu1 }
  0xe1   :  { %v188_v50 = vsub.f32 0.0, %v125_v41  ;;  %v189_v51 = vsub.f32 0.0, %v174_v42  ;;  %v129_v52 = vadd.f32 %v128_v48, %v56_v33  ;;  %v177_v53 = vadd.f32 %v176_v49, %v56_v33  ;;  %v941_v48 = vld [vmem:[%s1285_s3 + $0x8] sm:$0xff]   ;;  %v942_v49 = vld [vmem:[%s1285_s3 + $0x10] ss:$0 sps:$4 sm:$0xff]  }
  0xe2   :  { %v196_v54 = vmul.f32 1.442695, %v187_v45  ;;  %v212_v55 = vmul.f32 1.442695, %v195_v46  ;;  %v190_v56 = vsub.f32 0.0, %v127_v47  ;;  %v940_v47 = vld [vmem:[%s1285_s3] sm:$0xff]  }
  0xe3   :  { %v198_v57 = vmul.f32 1.442695, %v188_v50  ;;  %v200_v58 = vmul.f32 1.442695, %v189_v51  ;;  %v191_v59 = vsub.f32 0.0, %v129_v52  ;;  %v192_v60 = vsub.f32 0.0, %v177_v53  ;;  %v256_v50 = vpop.permute.xlu0 %255  ;;  %v251_v51 = vpop.permute.xlu1 %250 }
  0xe4   :  { %946 = vpow2.f32 %v196_v54  ;;  %v202_v61 = vmul.f32 1.442695, %v190_v56 }
  0xe5   :  { %948 = vpow2.f32 %v212_v55  ;;  %v204_v62 = vmul.f32 1.442695, %v191_v59  ;;  %v132_v63 = vpop.f32.mrb[4].mxu0  ;;  %v206_v0 = vmul.f32 1.442695, %v192_v60 }
  0xe6   :  { %950 = vpow2.f32 %v198_v57  ;;  %v133_v1 = vadd.f32 %v132_v63, %v61_v34  ;;  %v134_v2 = vpop.f32.mrb[5].mxu0 }
  0xe7   :  { %952 = vpow2.f32 %v200_v58  ;;  %v135_v3 = vadd.f32 %v134_v2, %v61_v34  ;;  %v136_v4 = vpop.f32.mrb[6].mxu0 }
  0xe8   :  { %954 = vpow2.f32 %v202_v61  ;;  %v193_v5 = vsub.f32 0.0, %v133_v1  ;;  %v137_v6 = vpop.f32.mrb[7].mxu0 }
  0xe9   :  { %956 = vpow2.f32 %v204_v62  ;;  %v194_v8 = vsub.f32 0.0, %v135_v3 }
  0xea   :  { %958 = vpow2.f32 %v206_v0  ;;  %v208_v9 = vmul.f32 1.442695, %v193_v5 }
  0xeb   :  { %v210_v10 = vmul.f32 1.442695, %v194_v8 }
  0xec   :  { %960 = vpow2.f32 %v208_v9 }
  0xed   :  { %962 = vpow2.f32 %v210_v10 }
  0xee   :  { %v947_v11 = vpop.eup %946 }
  0xef   :  { %v949_v12 = vpop.eup %948  ;;  %v214_v13 = vadd.f32 1.0, %v947_v11 }
  0xf0   :  { %v951_v14 = vpop.eup %950  ;;  %v222_v15 = vadd.f32 1.0, %v949_v12  ;;  %v266_v12 = vpop.permute.xlu0 %265 }
  0xf1   :  { %v953_v16 = vpop.eup %952  ;;  %964 = vrcp.f32 %v214_v13  ;;  %v215_v17 = vadd.f32 1.0, %v951_v14  ;;  %v261_v13 = vpop.permute.xlu1 %260 }
  0xf2   :  { %v955_v18 = vpop.eup %954  ;;  %966 = vrcp.f32 %v222_v15  ;;  %v216_v19 = vadd.f32 1.0, %v953_v16 }
  0xf3   :  { %v957_v20 = vpop.eup %956  ;;  %968 = vrcp.f32 %v215_v17  ;;  %v217_v21 = vadd.f32 1.0, %v955_v18 }
  0xf4   :  { %v959_v22 = vpop.eup %958  ;;  %970 = vrcp.f32 %v216_v19  ;;  %v218_v23 = vadd.f32 1.0, %v957_v20 }
  0xf5   :  { %972 = vrcp.f32 %v217_v21  ;;  %v219_v24 = vadd.f32 1.0, %v959_v22 }
  0xf6   :  { %v961_v25 = vpop.eup %960  ;;  %974 = vrcp.f32 %v218_v23 }
  0xf7   :  { %v963_v26 = vpop.eup %962  ;;  %976 = vrcp.f32 %v219_v24  ;;  %v220_v27 = vadd.f32 1.0, %v961_v25 }
  0xf8   :  { %v221_v28 = vadd.f32 1.0, %v963_v26 }
  0xf9   :  { %978 = vrcp.f32 %v220_v27 }
  0xfa   :  { %980 = vrcp.f32 %v221_v28 }
  0xfb   :  { %v965_v29 = vpop.eup %964 }
  0xfc   :  { %v967_v30 = vpop.eup %966 }
  0xfd   :  { %v969_v32 = vpop.eup %968  ;;  %v242_v39 = vpack.c.bf16 %v967_v30, %v967_v30 }
  0xfe   :  { %v971_v33 = vpop.eup %970 }
  0xff   :  { %v973_v34 = vpop.eup %972  ;;  %v304_v44 = vsel %vm296_vm3, %v242_v39, 0 }
 0x100   :  { %v975_v35 = vpop.eup %974  ;;  %v237_v36 = vpack.c.bf16 %v973_v34, %v965_v29 }
 0x101   :  { %v977_v37 = vpop.eup %976  ;;  %v238_v38 = vpack.c.bf16 %v975_v35, %v969_v32 }
 0x102   :  { %v239_v40 = vpack.c.bf16 %v977_v37, %v971_v33 }
 0x103   :  { %v979_v41 = vpop.eup %978  ;;  %306 = vmatprep.subr.bf16.mxu1 %v238_v38 }
 0x104   :  { %v981_v42 = vpop.eup %980  ;;  %897 = vmatpush3.bf16.msra.mxu0 %v239_v40  ;;  %307 = vmatpush1.bf16.msra.mxu1 %v237_v36  ;;  %v240_v43 = vpack.c.bf16 %v979_v41, %v979_v41  ;;  %v271_v40 = vpop.permute.xlu1 %270 }
 0x105   :  { %898 = vmatprep.subr.bf16.mxu0 %v1067_v31  ;;  %v241_v45 = vpack.c.bf16 %v981_v42, %v981_v42 }
 0x106   :  { %v298_v46 = vsel %vm296_vm3, %v240_v43, 0 }
 0x107   :  { %859 = vmatprep.subr.msk.bf16.mxu1 %vm296_vm3, %v241_v45 }
 0x108   :  { %899 = vmatpush3.bf16.msra.mxu0 %v304_v44  ;;  %309 = vmatpush1.bf16.msra.mxu1 %v298_v46 }
 0x109   :  { %912 = vmatprep.subr.bf16.mxu0 %v1067_v31 }
 0x10b   :  { %901 = vmatmul.mubr.msk.bf16.vlgmr.msra.gmra.mrb[8].mxu0 %vm286_vm4, %v940_v47  ;;  %860 = vmatmul.mubr.msk.bf16.vlgmr.msra.gmra.mrb[4].mxu1 %vm286_vm4, %v940_v47 }
 0x10c   :  { %904 = vmatprep.mubr.msk.bf16.mxu0 %vm1068_vm2, %v1067_v31  ;;  %348 = vmatprep.mubr.bf16.mxu1 %v1066_v7 }
 0x113   :  { %905 = vmatmul.mubr.msk.bf16.gmra.mrb[12].mxu0 %vm286_vm4, %v941_v48  ;;  %861 = vmatmul.mubr.msk.bf16.gmra.mrb[8].mxu1 %vm286_vm4, %v941_v48 }
 0x114   :  { %908 = vmatprep.mubr.msk.bf16.mxu0 %vm1068_vm2, %v1067_v31  ;;  %358 = vmatprep.mubr.bf16.mxu1 %v1066_v7 }
 0x11b   :  { %909 = vmatmul.mubr.msk.bf16.gmra.mrb[16].mxu0 %vm286_vm4, %v942_v49  ;;  %862 = vmatmul.mubr.msk.bf16.gmra.mrb[12].mxu1 %vm286_vm4, %v942_v49 }
 0x11c   :  { %918 = vmatprep.mubr.msk.bf16.mxu0 %vm1068_vm2, %v1067_v31  ;;  %606 = vmatprep.mubr.bf16.mxu1 %v1066_v7 }
 0x1de   :  { %v401_v52 = vpop.f32.mrb[8].mxu0  ;;  %v340_v53 = vpop.f32.mrb[4].mxu1 }
 0x1df   :  { %v402_v54 = vadd.f32 %v401_v52, %v251_v51  ;;  %v902_v55 = vpop.f32.mrb[9].mxu0  ;;  %v341_v56 = vadd.f32 %v340_v53, %v251_v51  ;;  %v342_v57 = vpop.f32.mrb[5].mxu1 }
 0x1e0   :  { %v404_v58 = vpop.f32.mrb[10].mxu0  ;;  %v343_v59 = vadd.f32 %v342_v57, %v251_v51  ;;  %v344_v60 = vpop.f32.mrb[6].mxu1 }
 0x1e1   :  { %v425_v61 = vsub.f32 0.0, %v402_v54  ;;  %v405_v62 = vadd.f32 %v404_v58, %v256_v50  ;;  %v423_v63 = vsub.f32 0.0, %v341_v56  ;;  %v345_v0 = vadd.f32 %v344_v60, %v256_v50  ;;  %v346_v1 = vpop.f32.mrb[7].mxu1  ;;  %v903_v2 = vpop.f32.mrb[11].mxu0 }
 0x1e2   :  { %v424_v3 = vsub.f32 0.0, %v343_v59  ;;  %v347_v4 = vadd.f32 %v346_v1, %v256_v50 }
 0x1e3   :  { %v442_v5 = vmul.f32 1.442695, %v425_v61  ;;  %v428_v6 = vsub.f32 0.0, %v405_v62  ;;  %v438_v8 = vmul.f32 1.442695, %v423_v63  ;;  %v426_v9 = vsub.f32 0.0, %v345_v0 }
 0x1e4   :  { %v440_v10 = vmul.f32 1.442695, %v424_v3  ;;  %v427_v11 = vsub.f32 0.0, %v347_v4 }
 0x1e5   :  { %982 = vpow2.f32 %v442_v5  ;;  %v448_v14 = vmul.f32 1.442695, %v428_v6  ;;  %v444_v15 = vmul.f32 1.442695, %v426_v9 }
 0x1e6   :  { %984 = vpow2.f32 %v438_v8  ;;  %v446_v16 = vmul.f32 1.442695, %v427_v11  ;;  %v409_v17 = vpop.f32.mrb[12].mxu0  ;;  %v350_v18 = vpop.f32.mrb[8].mxu1 }
 0x1e7   :  { %986 = vpow2.f32 %v448_v14  ;;  %v410_v19 = vadd.f32 %v409_v17, %v261_v13  ;;  %v906_v20 = vpop.f32.mrb[13].mxu0  ;;  %v351_v21 = vadd.f32 %v350_v18, %v261_v13  ;;  %v352_v22 = vpop.f32.mrb[9].mxu1 }
 0x1e8   :  { %988 = vpow2.f32 %v440_v10  ;;  %v412_v23 = vpop.f32.mrb[14].mxu0  ;;  %v353_v24 = vadd.f32 %v352_v22, %v261_v13  ;;  %v354_v25 = vpop.f32.mrb[10].mxu1 }
 0x1e9   :  { %990 = vpow2.f32 %v444_v15  ;;  %v431_v26 = vsub.f32 0.0, %v410_v19  ;;  %v413_v27 = vadd.f32 %v412_v23, %v266_v12  ;;  %v429_v28 = vsub.f32 0.0, %v351_v21  ;;  %v356_v29 = vpop.f32.mrb[11].mxu1  ;;  %v907_v30 = vpop.f32.mrb[15].mxu0 }
 0x1ea   :  { %992 = vpow2.f32 %v446_v16  ;;  %v430_v32 = vsub.f32 0.0, %v353_v24  ;;  %v355_v33 = vadd.f32 %v354_v25, %v266_v12  ;;  %v357_v39 = vadd.f32 %v356_v29, %v266_v12 }
 0x1eb   :  { %v454_v34 = vmul.f32 1.442695, %v431_v26  ;;  %v434_v35 = vsub.f32 0.0, %v413_v27  ;;  %v450_v36 = vmul.f32 1.442695, %v429_v28 }
 0x1ec   :  { %v452_v37 = vmul.f32 1.442695, %v430_v32  ;;  %v432_v38 = vsub.f32 0.0, %v355_v33  ;;  %v433_v51 = vsub.f32 0.0, %v357_v39 }
 0x1ed   :  { %994 = vpow2.f32 %v454_v34  ;;  %v460_v41 = vmul.f32 1.442695, %v434_v35 }
 0x1ee   :  { %996 = vpow2.f32 %v450_v36  ;;  %v456_v42 = vmul.f32 1.442695, %v432_v38  ;;  %v417_v43 = vpop.f32.mrb[16].mxu0  ;;  %v360_v44 = vpop.f32.mrb[12].mxu1  ;;  %v458_v2 = vmul.f32 1.442695, %v433_v51 }
 0x1ef   :  { %v983_v45 = vpop.eup %982  ;;  %998 = vpow2.f32 %v460_v41  ;;  %v418_v46 = vadd.f32 %v417_v43, %v271_v40  ;;  %v362_v47 = vpop.f32.mrb[13].mxu1  ;;  %v361_v63 = vadd.f32 %v360_v44, %v271_v40  ;;  %v943_v51 = vld [vmem:[%s1287_s5] sm:$0xff]  }
 0x1f0   :  { %v910_v48 = vpop.f32.mrb[17].mxu0  ;;  %v985_v49 = vpop.eup %984  ;;  %v470_v50 = vadd.f32 1.0, %v983_v45  ;;  %1000 = vpow2.f32 %v452_v37  ;;  %v363_v3 = vadd.f32 %v362_v47, %v271_v40 }
 0x1f1   :  { %v364_v52 = vpop.f32.mrb[14].mxu1  ;;  %v420_v53 = vpop.f32.mrb[18].mxu0  ;;  %v468_v55 = vadd.f32 1.0, %v985_v49  ;;  %1002 = vpow2.f32 %v456_v42  ;;  %v437_v56 = vsub.f32 0.0, %v418_v46  ;;  %v435_v8 = vsub.f32 0.0, %v361_v63 }
 0x1f2   :  { %v987_v54 = vpop.eup %986  ;;  %v365_v57 = vpop.f32.mrb[15].mxu1  ;;  %1004 = vrcp.f32 %v470_v50  ;;  %v436_v11 = vsub.f32 0.0, %v363_v3 }
 0x1f3   :  { %v911_v58 = vpop.f32.mrb[19].mxu0  ;;  %v989_v59 = vpop.eup %988  ;;  %v473_v60 = vadd.f32 1.0, %v987_v54  ;;  %1006 = vrcp.f32 %v468_v55  ;;  %v466_v5 = vmul.f32 1.442695, %v437_v56  ;;  %v462_v17 = vmul.f32 1.442695, %v435_v8 }
 0x1f4   :  { %v991_v61 = vpop.eup %990  ;;  %v469_v62 = vadd.f32 1.0, %v989_v59  ;;  %v464_v20 = vmul.f32 1.442695, %v436_v11  ;;  %v944_v57 = vld [vmem:[%s1287_s5 + $0x8] sm:$0xff]   ;;  %v945_v58 = vld [vmem:[%s1287_s5 + $0x10] ss:$0 sps:$4 sm:$0xff]   ;;  %v520_v59 = vpop.permute.xlu0 %519 }
 0x1f5   :  { %v993_v0 = vpop.eup %992  ;;  %1008 = vrcp.f32 %v473_v60  ;;  %v471_v1 = vadd.f32 1.0, %v991_v61  ;;  %v525_v60 = vpop.permute.xlu1 %524  ;;  %s1070_s5 = smov [#allocation3]  }
 0x1f6   :  { %1010 = vrcp.f32 %v469_v62  ;;  %v472_v4 = vadd.f32 1.0, %v993_v0  ;;  %s841_s15 = sshll.u32 %s1070_s5, 4  ;;  %s842_s15 = int_to_ptr.vmem [resolvable:$true] %s841_s15 }
 0x1f7   :  { %1012 = vrcp.f32 %v471_v1  ;;  %v995_v6 = vpop.eup %994  ;;  %s1042_s16 = scalar_lea.vmem %s842_s15, 48  ;;  %s1046_s8 = scalar_lea.vmem %s842_s15, 64 }
 0x1f8   :  { %1014 = vrcp.f32 %v472_v4  ;;  %v997_v9 = vpop.eup %996  ;;  %v476_v10 = vadd.f32 1.0, %v995_v6  ;;  %v530_v61 = vpop.permute.xlu0 %529  ;;  %p1043_p0 = scmp.ne.s32.totalorder %s842_s15, %s1042_s16  ;;  %p1047_p1 = scmp.lt.s32.totalorder %s842_s15, %s842_s15 }
 0x1f9   :  { %1016 = vpow2.f32 %v458_v2  ;;  %v999_v12 = vpop.eup %998  ;;  %v474_v13 = vadd.f32 1.0, %v997_v9  ;;  %v1255_v62 = vpop.permute.xlu1 %534  ;;  %p1048_p2 = scmp.lt.s32.totalorder %s1046_s8, %s1042_s16 }
 0x1fa   :  { %1018 = vpow2.f32 %v466_v5  ;;  %v1001_v14 = vpop.eup %1000  ;;  %v479_v15 = vadd.f32 1.0, %v999_v12 }
 0x1fb   :  { %v1003_v16 = vpop.eup %1002  ;;  %1020 = vrcp.f32 %v476_v10  ;;  %v475_v26 = vadd.f32 1.0, %v1001_v14  ;;  %p1049_p3 = por %p1048_p2, %p1047_p1 }
 0x1fc   :  { %v1005_v18 = vpop.eup %1004  ;;  %1022 = vrcp.f32 %v479_v15  ;;  %v477_v19 = vadd.f32 1.0, %v1003_v16  ;;  %v714_v0 = vpop.permute.xlu0 %713 }
 0x1fd   :  { %v1007_v21 = vpop.eup %1006  ;;  %1024 = vrcp.f32 %v474_v13  ;;  %v719_v9 = vpop.permute.xlu1 %718  ;;  %p1050_p4 = pnand %p1049_p3, %p1043_p0 }
 0x1fe   :  { %1026 = vrcp.f32 %v477_v19 }
 0x1ff   :  { %v1009_v22 = vpop.eup %1008  ;;  %1028 = vpow2.f32 %v462_v17 }
 0x200   :  { %v1011_v23 = vpop.eup %1010  ;;  %v505_v24 = vpack.c.bf16 %v1009_v22, %v1005_v18  ;;  %1030 = vpow2.f32 %v464_v20 }
 0x201   :  { %v1013_v25 = vpop.eup %1012  ;;  %1032 = vrcp.f32 %v475_v26 }
 0x202   :  { %v1015_v27 = vpop.eup %1014  ;;  %913 = vmatpush3.bf16.msra.mxu0 %v505_v24  ;;  %v503_v28 = vpack.c.bf16 %v1013_v25, %v1007_v21 }
 0x203   :  { %v1017_v29 = vpop.eup %1016  ;;  %v504_v30 = vpack.c.bf16 %v1015_v27, %v1011_v23  ;;  %914 = vmatprep.subr.bf16.mxu0 %v1067_v31 }
 0x204   :  { %v1019_v32 = vpop.eup %1018  ;;  %v478_v33 = vadd.f32 1.0, %v1017_v29 }
 0x205   :  { %v482_v34 = vadd.f32 1.0, %v1019_v32  ;;  %574 = vmatprep.subr.bf16.mxu1 %v504_v30  ;;  %v1021_v35 = vpop.eup %1020  ;;  %v724_v32 = vpop.permute.xlu1 %723 }
 0x206   :  { %1034 = vrcp.f32 %v478_v33  ;;  %575 = vmatpush1.bf16.msra.mxu1 %v503_v28  ;;  %v1023_v36 = vpop.eup %1022 }
 0x207   :  { %1036 = vrcp.f32 %v482_v34  ;;  %v1025_v37 = vpop.eup %1024  ;;  %v508_v38 = vpack.c.bf16 %v1023_v36, %v1021_v35 }
 0x208   :  { %v1027_v39 = vpop.eup %1026 }
 0x209   :  { %v1029_v40 = vpop.eup %1028  ;;  %915 = vmatpush3.bf16.msra.mxu0 %v508_v38  ;;  %v506_v41 = vpack.c.bf16 %v1027_v39, %v1025_v37 }
 0x20a   :  { %v1031_v42 = vpop.eup %1030  ;;  %v480_v43 = vadd.f32 1.0, %v1029_v40  ;;  %916 = vmatprep.subr.bf16.mxu0 %v1067_v31 }
 0x20b   :  { %v481_v44 = vadd.f32 1.0, %v1031_v42  ;;  %v1033_v45 = vpop.eup %1032 }
 0x20c   :  { %1038 = vrcp.f32 %v480_v43 }
 0x20d   :  { %1040 = vrcp.f32 %v481_v44 }
 0x210   :  { %v1035_v46 = vpop.eup %1034 }
 0x211   :  { %v1037_v47 = vpop.eup %1036  ;;  %v507_v48 = vpack.c.bf16 %v1035_v46, %v1033_v45 }
 0x212   :  { %v511_v49 = vpack.c.bf16 %v1037_v47, %v1037_v47 }
 0x213   :  { %576 = vmatprep.subr.bf16.mxu1 %v507_v48 }
 0x214   :  { %577 = vmatpush1.bf16.msra.mxu1 %v506_v41  ;;  %v572_v50 = vsel %vm78_vm0, %v511_v49, 0 }
 0x215   :  { %917 = vmatpush3.bf16.msra.mxu0 %v572_v50 }
 0x216   :  { %v1039_v52 = vpop.eup %1038 }
 0x217   :  { %v1041_v53 = vpop.eup %1040  ;;  %v509_v54 = vpack.c.bf16 %v1039_v52, %v1039_v52 }
 0x218   :  { %919 = vmatmul.mubr.msk.bf16.vlgmr.msra.gmra.mrb[20].mxu0 %vm555_vm5, %v943_v51  ;;  %v510_v55 = vpack.c.bf16 %v1041_v53, %v1041_v53 }
 0x219   :  { %922 = vmatprep.mubr.msk.bf16.mxu0 %vm1068_vm2, %v1067_v31  ;;  %v566_v56 = vsel %vm78_vm0, %v509_v54, 0 }
 0x21a   :  { %869 = vmatprep.subr.msk.bf16.mxu1 %vm78_vm0, %v510_v55 }
 0x21b   :  { %579 = vmatpush1.bf16.msra.mxu1 %v566_v56 }
 0x21e   :  { %870 = vmatmul.mubr.msk.bf16.vlgmr.msra.gmra.mrb[16].mxu1 %vm555_vm5, %v943_v51 }
 0x21f   :  { %616 = vmatprep.mubr.bf16.mxu1 %v1066_v7 }
 0x220   :  { %923 = vmatmul.mubr.msk.bf16.gmra.mrb[24].mxu0 %vm555_vm5, %v944_v57 }
 0x221   :  { %926 = vmatprep.mubr.msk.bf16.mxu0 %vm1068_vm2, %v1067_v31 }
 0x226   :  { %871 = vmatmul.mubr.msk.bf16.gmra.mrb[20].mxu1 %vm555_vm5, %v944_v57 }
 0x227   :  { %626 = vmatprep.mubr.bf16.mxu1 %v1066_v7  ;;  %v1257_v7 = vpop.permute.xlu0 %539 }
 0x228   :  { %927 = vmatmul.mubr.msk.bf16.gmra.mrb[28].mxu0 %vm555_vm5, %v945_v58 }
 0x22b   :  { %v729_v37 = vpop.permute.xlu0 %728 }
 0x22e   :  { %872 = vmatmul.mubr.msk.bf16.gmra.mrb[24].mxu1 %vm555_vm5, %v945_v58 }
 0x2eb   :  { %v669_v63 = vpop.f32.mrb[20].mxu0 }
 0x2ec   :  { %v670_v31 = vadd.f32 %v669_v63, %v520_v59  ;;  %v920_v1 = vpop.f32.mrb[21].mxu0 }
 0x2ed   :  { %v672_v2 = vpop.f32.mrb[22].mxu0 }
 0x2ee   :  { %v693_v3 = vmax.f32 %v670_v31, 0.0  ;;  %v673_v4 = vadd.f32 %v672_v2, %v525_v60  ;;  %v921_v5 = vpop.f32.mrb[23].mxu0  ;;  %v734_v2 = vpop.permute.xlu1 %733 }
 0x2f0   :  { %v738_v6 = vmul.f32 %v714_v0, %v693_v3  ;;  %v696_v8 = vmax.f32 %v673_v4, 0.0 }
 0x2f1   :  { %v608_v11 = vpop.f32.mrb[16].mxu1 }
 0x2f2   :  { %v741_v10 = vmul.f32 %v719_v9, %v696_v8  ;;  %v609_v12 = vadd.f32 %v608_v11, %v520_v59  ;;  %v610_v13 = vpop.f32.mrb[17].mxu1  ;;  %v772_v15 = vsel %vm771_vm6, %v738_v6, 0.0 }
 0x2f3   :  { %v677_v14 = vpop.f32.mrb[24].mxu0  ;;  %v611_v17 = vadd.f32 %v610_v13, %v520_v59  ;;  %v612_v18 = vpop.f32.mrb[18].mxu1 }
 0x2f4   :  { %v773_v16 = vsel %vm771_vm6, %v741_v10, 0.0  ;;  %v678_v19 = vadd.f32 %v677_v14, %v530_v61  ;;  %v924_v20 = vpop.f32.mrb[25].mxu0  ;;  %v691_v22 = vmax.f32 %v609_v12, 0.0  ;;  %v613_v23 = vadd.f32 %v612_v18, %v525_v60  ;;  %v614_v24 = vpop.f32.mrb[19].mxu1 }
 0x2f5   :  { %v774_v21 = vadd.f32 %v773_v16, %v772_v15  ;;  %v680_v25 = vpop.f32.mrb[26].mxu0  ;;  %v692_v26 = vmax.f32 %v611_v17, 0.0  ;;  %v615_v27 = vadd.f32 %v614_v24, %v525_v60 }
 0x2f6   :  { %v699_v28 = vmax.f32 %v678_v19, 0.0  ;;  %v681_v29 = vadd.f32 %v680_v25, %v1255_v62  ;;  %v925_v30 = vpop.f32.mrb[27].mxu0  ;;  %v694_v33 = vmax.f32 %v613_v23, 0.0  ;;  %v736_v38 = vmul.f32 %v714_v0, %v691_v22 }
 0x2f7   :  { %v695_v34 = vmax.f32 %v615_v27, 0.0  ;;  %v737_v40 = vmul.f32 %v714_v0, %v692_v26  ;;  %v793_v26 = vlaneseq }
 0x2f8   :  { %v744_v35 = vmul.f32 %v724_v32, %v699_v28  ;;  %v702_v36 = vmax.f32 %v681_v29, 0.0  ;;  %v739_v39 = vmul.f32 %v719_v9, %v694_v33 }
 0x2f9   :  { %v740_v41 = vmul.f32 %v719_v9, %v695_v34  ;;  %v618_v44 = vpop.f32.mrb[20].mxu1  ;;  %v794_v34 = vshrl.u32 %v793_v26, 7  ;;  %vm832_vm7 = vcmp.lt.s32.totalorder %v793_v26, 300 }
 0x2fa   :  { %v775_v42 = vsel %vm771_vm6, %v744_v35, 0.0  ;;  %v747_v43 = vmul.f32 %v729_v37, %v702_v36  ;;  %v751_v45 = vadd.f32 %v739_v39, %v736_v38  ;;  %v619_v47 = vadd.f32 %v618_v44, %v530_v61  ;;  %v620_v48 = vpop.f32.mrb[21].mxu1 }
 0x2fb   :  { %v776_v46 = vadd.f32 %v775_v42, %v774_v21  ;;  %v685_v49 = vpop.f32.mrb[28].mxu0  ;;  %v761_v50 = vadd.f32 %v740_v41, %v737_v40  ;;  %v621_v52 = vadd.f32 %v620_v48, %v530_v61  ;;  %v622_v53 = vpop.f32.mrb[22].mxu1  ;;  %v795_v39 = vsub.s32 0, %v794_v34 }
 0x2fc   :  { %v777_v51 = vsel %vm771_vm6, %v747_v43, 0.0  ;;  %v686_v54 = vadd.f32 %v685_v49, %v1257_v7  ;;  %v928_v55 = vpop.f32.mrb[29].mxu0  ;;  %v697_v57 = vmax.f32 %v619_v47, 0.0  ;;  %v623_v58 = vadd.f32 %v622_v53, %v1255_v62  ;;  %v624_v59 = vpop.f32.mrb[23].mxu1 }
 0x2fd   :  { %v778_v56 = vadd.f32 %v777_v51, %v776_v46  ;;  %v688_v60 = vpop.f32.mrb[30].mxu0  ;;  %v698_v63 = vmax.f32 %v621_v52, 0.0  ;;  %v625_v0 = vadd.f32 %v624_v59, %v1255_v62  ;;  %v791_v41 = vpop.permute.xlu0 %790  ;;  %v1069_v43 = vmov 1966171168  }
 0x2fe   :  { %v705_v31 = vmax.f32 %v686_v54, 0.0  ;;  %v929_v1 = vpop.f32.mrb[31].mxu0  ;;  %v742_v3 = vmul.f32 %v724_v32, %v697_v57  ;;  %v700_v4 = vmax.f32 %v623_v58, 0.0  ;;  %v808_v44 = vunpack.c.l.s4 %v1069_v43 }
 0x2ff   :  { %v743_v5 = vmul.f32 %v724_v32, %v698_v63  ;;  %v701_v61 = vmax.f32 %v625_v0, 0.0  ;;  %v796_v48 = vrot.slane %v791_v41, %v795_v39 }
 0x300   :  { %v750_v6 = vmul.f32 %v734_v2, %v705_v31  ;;  %v752_v8 = vadd.f32 %v751_v45, %v742_v3  ;;  %v745_v9 = vmul.f32 %v729_v37, %v700_v4  ;;  %v809_v51 = vunpack.c.0.s8 %v808_v44 }
 0x301   :  { %v762_v10 = vadd.f32 %v761_v50, %v743_v5  ;;  %v746_v11 = vmul.f32 %v729_v37, %v701_v61  ;;  %v628_v13 = vpop.f32.mrb[24].mxu1 }
 0x302   :  { %v779_v12 = vsel %vm771_vm6, %v750_v6, 0.0  ;;  %v753_v14 = vadd.f32 %v752_v8, %v745_v9  ;;  %v629_v16 = vadd.f32 %v628_v13, %v1257_v7  ;;  %v630_v62 = vpop.f32.mrb[25].mxu1  ;;  %v812_v57 = vsub.s32 %v809_v51, %v794_v34 }
 0x303   :  { %v780_v15 = vadd.f32 %v779_v12, %v778_v56  ;;  %v763_v17 = vadd.f32 %v762_v10, %v746_v11  ;;  %v631_v18 = vadd.f32 %v630_v62, %v1257_v7  ;;  %v632_v19 = vpop.f32.mrb[26].mxu1 }
 0x304   :  { %v703_v21 = vmax.f32 %v629_v16, 0.0  ;;  %v633_v22 = vpop.f32.mrb[27].mxu1 }
 0x305   :  { %v781_v20 = vrot.slane %v780_v15, 4  ;;  %v704_v23 = vmax.f32 %v631_v18, 0.0 }
 0x306   :  { %v748_v25 = vmul.f32 %v734_v2, %v703_v21 }
 0x307   :  { %v782_v24 = vadd.f32 %v781_v20, %v780_v15  ;;  %v749_v27 = vmul.f32 %v734_v2, %v704_v23 }
 0x308   :  { %v754_v29 = vadd.f32 %v753_v14, %v748_v25 }
 0x309   :  { %v783_v28 = vrot.slane %v782_v24, 2  ;;  %v764_v30 = vadd.f32 %v763_v17, %v749_v27 }
 0x30a   :  { %v755_v33 = vrot.slane %v754_v29, 4 }
 0x30b   :  { %v784_v32 = vadd.f32 %v783_v28, %v782_v24  ;;  %v765_v35 = vrot.slane %v764_v30, 4 }
 0x30c   :  { %v756_v36 = vadd.f32 %v755_v33, %v754_v29 }
 0x30d   :  { %v785_v37 = vrot.slane %v784_v32, 1  ;;  %v766_v38 = vadd.f32 %v765_v35, %v764_v30 }
 0x30e   :  { %v757_v7 = vrot.slane %v756_v36, 2 }
 0x30f   :  { %v767_v40 = vrot.slane %v766_v38, 2  ;;  %v786_v45 = vadd.f32 %v785_v37, %v784_v32 }
 0x310   :  { %v758_v42 = vadd.f32 %v757_v7, %v756_v36 }
 0x311   :  { %v768_v46 = vadd.f32 %v767_v40, %v766_v38  ;;  %v799_v53 = vadd.f32 %v796_v48, %v786_v45 }
 0x312   :  { %v759_v47 = vrot.slane %v758_v42, 1 }
 0x313   :  { %v769_v49 = vrot.slane %v768_v46, 1  ;;  %v802_v59 = vmax.f32 %v799_v53, 0.0 }
 0x314   :  { %v760_v50 = vadd.f32 %v759_v47, %v758_v42 }
 0x315   :  { %v770_v52 = vadd.f32 %v769_v49, %v768_v46  ;;  %v820_v0 = vrot.slane %v802_v59, %v812_v57 }
 0x316   :  { %v797_v54 = vadd.f32 %v796_v48, %v760_v50 }
 0x317   :  { %v798_v55 = vadd.f32 %v796_v48, %v770_v52 }
 0x318   :  { %v800_v56 = vmax.f32 %v797_v54, 0.0 }
 0x319   :  { %v801_v58 = vmax.f32 %v798_v55, 0.0 }
 0x31b   :  { %v806_v60 = vcombine.low %v800_v56, %v801_v58 }
 0x31d   :  { %v813_v63 = vrot.slane %v806_v60, %v812_v57 }
 0x31f   :  { %v821_v31 = vcombine.low %v813_v63, %v820_v0 }
 0x321   :  { %v828_v1 = vrot.slane %v821_v31, %v812_v57 }
 0x323   :  { %834 = vst.msk [vmem:[#allocation3] sm:$0x7] %vm832_vm7, %v828_v1 }
 0x324   :  { %1053 = shalt.err (!%p1050_p4)
}
 0x325   :  { %s1054_s4 = scalar_lea.hbm %s1291_s9, 48 }
 0x326   :  { %p1055_p5 = scmp.ne.s32.totalorder %s1291_s9, %s1054_s4  ;;  %p1058_p6 = scmp.lt.u32.totalorder %s1054_s4, %s1291_s9 }
 0x328   :  { %p1060_p7 = pnand %p1058_p6, %p1055_p5 }
 0x32a   :  { %1063 = shalt.err (!%p1060_p7)
}
 0x32b   :  { %844 = dma.vmem_to_hbm [thread:$0]  %s842_s15, 48, %s1291_s9, [#allocation4]  }
 0x32c   :  { %1064 = dma.done.wait [#allocation4], 48  }
 0x32d   :  { %1065 = vsyncadd [#allocation4], 4294967248 }
 0x32e   :  { %848 = vsyncpa [#allocation4], 1 }

</bundles_post_ra>
